<compile_context>
chip_gen: v5e
topology: v5e:2x2
jax: 0.10.0
libtpu: 0.0.40
codegen_flags: <defaults>
</compile_context>

<pallas_src>
import functools

import jax
import jax.numpy as jnp
from jax.experimental import pallas as pl
from jax.experimental.pallas import tpu as pltpu

EPS = 1e-5


def _freq_attn_kernel(x_ref, w1_ref, b1_ref, w2_ref, b2_ref, w3_ref, b3_ref,
                      avg_ref, sl_ref, sr_ref, bc_ref, o_ref, *, bb, FT):
    """One grid step: bb batches.  Lanes of the squeeze chain = bb*F."""
    f32 = jnp.float32

    # (1) conv1 (1x1, BN-folded) BEFORE the pool — one lane-dense matmul over all
    #     bb batches (tile-aligned lane concat of 256-wide slabs).
    if bb == 1:
        x_all = x_ref[0]                                                  # (C, FT)
    else:
        x_all = jnp.concatenate([x_ref[b] for b in range(bb)], axis=-1)   # (C, bb*FT)
    t = jnp.dot(w1_ref[...], x_all, preferred_element_type=f32)           # (MP, bb*FT)

    # (2) time-average pool over T via a hoisted block-diagonal constant.
    pooled = jnp.dot(t, avg_ref[...], preferred_element_type=f32)         # (MP, bb*F)
    y1 = jnp.maximum(pooled + b1_ref[...], 0.0)

    # (3) conv2 (k=3, pad=1): zero-padded neighbours via constant block-diagonal
    #     shift matmuls; all three taps fused into one (MP, 3*MP) matmul.
    y1l = jnp.dot(y1, sl_ref[...], preferred_element_type=f32)            # (MP, bb*F)
    y1r = jnp.dot(y1, sr_ref[...], preferred_element_type=f32)            # (MP, bb*F)
    ystk = jnp.concatenate([y1l, y1, y1r], axis=0)                        # (3*MP, bb*F)
    y2 = jnp.maximum(
        jnp.dot(w2_ref[...], ystk, preferred_element_type=f32) + b2_ref[...],
        0.0)                                                              # (MP, bb*F)

    # (4) broadcast over T BEFORE conv3 + sigmoid (exact: 0/1 column replication
    #     commutes with the per-row bias and the elementwise sigmoid), so the final
    #     matmul is lane-dense.
    y2b = jnp.dot(y2, bc_ref[...], preferred_element_type=f32)            # (MP, bb*FT)
    gate = jax.nn.sigmoid(
        jnp.dot(w3_ref[...], y2b, preferred_element_type=f32) + b3_ref[...])  # (C, bb*FT)

    # (5) re-read x (never held live across the gate math) and scale.  Lane slices
    #     are at multiples of FT=256 -> tile-aligned.
    for b in range(bb):
        o_ref[b] = (x_ref[b] * gate[:, b * FT:(b + 1) * FT]).astype(o_ref.dtype)


def _pick_batch_block(B):
    """Largest divisor of B that is <= 8 and (for B>=2) keeps >= 2 grid steps."""
    bb = 1
    for cand in range(1, min(B, 8) + 1):
        if B % cand == 0 and (B // cand >= 2 or B == 1):
            bb = cand
    return bb


def frequency_attention(x, w1f, b1, w2f, b2, w3f, b3, *, batch_block=None,
                        donate_x=False):
    """x: (B, C, F, T) f32.  Weights are BN-folded (see fold_bn):
       w1f (M, C), b1 (M, 1), w2f (M, M, 3), b2 (M, 1), w3f (C, M), b3 (C, 1)."""
    B, C, F, T = x.shape
    M = w1f.shape[0]
    Co = w3f.shape[0]
    assert Co == C, "forward() requires chs_out == chs_in"
    FT = F * T
    MP = max(8, ((M + 7) // 8) * 8)          # pad mid channels to the sublane tile

    bb = _pick_batch_block(B) if batch_block is None else batch_block
    assert B % bb == 0, "batch_block must divide the batch size"
    G = bb * F                                # lanes of the squeeze chain
    L = bb * FT                               # lanes of the wide stages

    f32 = jnp.float32

    # --- host-side packing: pad mid channels, fuse the 3 conv2 taps into one weight ---
    w1p = jnp.zeros((MP, C), f32).at[:M].set(w1f)
    b1p = jnp.zeros((MP, 1), f32).at[:M].set(b1)
    w2p = jnp.zeros((MP, 3 * MP), f32)
    for k in range(3):    # contraction layout matches concat([y1_left, y1, y1_right])
        w2p = w2p.at[:M, k * MP:k * MP + M].set(w2f[:, :, k])
    b2p = jnp.zeros((MP, 1), f32).at[:M].set(b2)
    w3p = jnp.zeros((Co, MP), f32).at[:, :M].set(w3f)

    # --- host-side constant structure matrices (hoisted out of the kernel body) ---
    rows = jnp.arange(L)
    cols = jnp.arange(G)
    rb, rf = rows // FT, (rows % FT) // T        # (batch, freq) of each (b, f, t) row
    cb, cf = cols // F, cols % F
    avgM = jnp.where((rb[:, None] == cb[None, :]) & (rf[:, None] == cf[None, :]),
                     1.0 / T, 0.0).astype(f32)                       # (L, G) pool
    r = jnp.arange(G)
    c = jnp.arange(G)
    same_blk = (r[:, None] // F) == (c[None, :] // F)
    slM = jnp.where(same_blk & (c[None, :] == r[:, None] + 1), 1.0, 0.0).astype(f32)
    srM = jnp.where(same_blk & (c[None, :] == r[:, None] - 1), 1.0, 0.0).astype(f32)
    bcM = (avgM.T * T).astype(f32)                                   # (G, L) broadcast

    x_flat = x.reshape(B, C, FT)              # lane-dense trailing dim (F*T)

    def const_spec(shape):
        return pl.BlockSpec(shape, lambda i: (0,) * len(shape))

    kernel = functools.partial(_freq_attn_kernel, bb=bb, FT=FT)
    out_flat = pl.pallas_call(
        kernel,
        out_shape=jax.ShapeDtypeStruct((B, C, FT), x.dtype),
        grid=(B // bb,),
        in_specs=[
            pl.BlockSpec((bb, C, FT), lambda i: (i, 0, 0)),   # bb-batch slab of x
            const_spec((MP, C)),                              # w1 (BN-folded, padded)
            const_spec((MP, 1)),                              # b1
            const_spec((MP, 3 * MP)),                         # fused conv2 taps
            const_spec((MP, 1)),                              # b2
            const_spec((Co, MP)),                             # w3
            const_spec((Co, 1)),                              # b3
            const_spec((L, G)),                               # time-average pool
            const_spec((G, G)),                               # shift left  (f <- f-1)
            const_spec((G, G)),                               # shift right (f <- f+1)
            const_spec((G, L)),                               # T-broadcast
        ],
        out_specs=pl.BlockSpec((bb, C, FT), lambda i: (i, 0, 0)),
        compiler_params=pltpu.CompilerParams(
            dimension_semantics=("parallel",)),
        input_output_aliases=({0: 0} if donate_x else {}),
    )(x_flat, w1p, b1p, w2p, b2p, w3p, b3, avgM, slM, srM, bcM)
    return out_flat.reshape(B, C, F, T)


def fold_bn(w, gamma, beta, mean, var):
    """Fold inference-mode BatchNorm1d into a bias-free conv weight."""
    scale = gamma / jnp.sqrt(var + EPS)
    wf = w * scale.reshape((-1,) + (1,) * (w.ndim - 1))
    bias = (beta - mean * scale)[:, None]          # (out_ch, 1)
    return wf, bias


def reference_forward(x, W1, bn1, W2, bn2, W3, bn3):
    """Pure-JAX reference matching the PyTorch forward (BN in eval mode)."""
    def bn(y, p):
        g, b, m, v = p
        return g[None, :, None] * (y - m[None, :, None]) / jnp.sqrt(
            v[None, :, None] + EPS) + b[None, :, None]

    B, C, F, T = x.shape
    pooled = x.mean(axis=-1)                                        # (B, C, F)
    y1 = jax.nn.relu(bn(jnp.einsum('mc,bcf->bmf', W1[:, :, 0], pooled), bn1))
    y1p = jnp.pad(y1, ((0, 0), (0, 0), (1, 1)))
    y2 = (jnp.einsum('nm,bmf->bnf', W2[:, :, 0], y1p[:, :, 0:F])
          + jnp.einsum('nm,bmf->bnf', W2[:, :, 1], y1p[:, :, 1:F + 1])
          + jnp.einsum('nm,bmf->bnf', W2[:, :, 2], y1p[:, :, 2:F + 2]))
    y2 = jax.nn.relu(bn(y2, bn2))
    y3 = jnp.einsum('om,bmf->bof', W3[:, :, 0], y2)
    gate = jax.nn.sigmoid(bn(y3, bn3))
    return x * gate[..., None]


if __name__ == "__main__":
    # FrequencyAttention(chs_in=64, chs_out=64, size=16); expansion=16 -> chs_mid=4.
    B, C, F, T = 2, 64, 16, 16
    M = C // 16
    C_OUT = C  # the .view(b, chs, f, 1) in forward() requires chs_out == chs_in

    key = jax.random.PRNGKey(0)
    ks = jax.random.split(key, 16)

    x = jax.random.normal(ks[0], (B, C, F, T), jnp.float32)

    # Conv weights (PyTorch Conv1d weight shape: (out, in, k)), no bias.
    W1 = 0.2 * jax.random.normal(ks[1], (M, C, 1), jnp.float32)
    W2 = 0.2 * jax.random.normal(ks[2], (M, M, 3), jnp.float32)
    W3 = 0.2 * jax.random.normal(ks[3], (C_OUT, M, 1), jnp.float32)

    def bn_params(k, n):
        k1, k2, k3, k4 = jax.random.split(k, 4)
        gamma = 1.0 + 0.1 * jax.random.normal(k1, (n,), jnp.float32)
        beta = 0.1 * jax.random.normal(k2, (n,), jnp.float32)
        mean = 0.1 * jax.random.normal(k3, (n,), jnp.float32)
        var = 0.5 + jnp.abs(jax.random.normal(k4, (n,), jnp.float32))
        return gamma, beta, mean, var

    bn1 = bn_params(ks[4], M)
    bn2 = bn_params(ks[5], M)
    bn3 = bn_params(ks[6], C_OUT)

    # Fold BN (eval mode) into the conv weights for the kernel.
    # TODO(synk): training-mode BatchNorm (batch statistics) is not implemented.
    w1f, b1 = fold_bn(W1[:, :, 0], *bn1)
    w2f, b2 = fold_bn(W2, *bn2)
    w3f, b3 = fold_bn(W3[:, :, 0], *bn3)

    # --- config 1: the small demo shape (B=2 -> batch_block=1, grid=(2,) parallel) ---
    out = frequency_attention(x, w1f, b1, w2f, b2, w3f, b3)
    out = jax.block_until_ready(out)
    ref = reference_forward(x, W1, bn1, W2, bn2, W3, bn3)
    assert out.shape == (B, C, F, T)
    assert jnp.allclose(out, ref, atol=1e-4, rtol=1e-4), float(
        jnp.max(jnp.abs(out - ref)))

    # --- config 2: larger batch exercising the batch-folded path (bb=4, grid=(2,)) ---
    B2 = 8
    x2 = jax.random.normal(ks[7], (B2, C, F, T), jnp.float32)
    out2 = frequency_attention(x2, w1f, b1, w2f, b2, w3f, b3)
    out2 = jax.block_until_ready(out2)
    ref2 = reference_forward(x2, W1, bn1, W2, bn2, W3, bn3)
    assert out2.shape == (B2, C, F, T)
    assert jnp.allclose(out2, ref2, atol=1e-4, rtol=1e-4), float(
        jnp.max(jnp.abs(out2 - ref2)))

    print("KERNEL_OK")
</pallas_src>

<mosaic_0001>
module attributes {stable_mosaic.version = 11 : i64} {
  func.func @_freq_attn_kernel(%arg0: i32, %arg1: memref<1x64x256xf32, #tpu.memory_space<vmem>>, %arg2: memref<8x64xf32, #tpu.memory_space<vmem>>, %arg3: memref<8x1xf32, #tpu.memory_space<vmem>>, %arg4: memref<8x24xf32, #tpu.memory_space<vmem>>, %arg5: memref<8x1xf32, #tpu.memory_space<vmem>>, %arg6: memref<64x8xf32, #tpu.memory_space<vmem>>, %arg7: memref<64x1xf32, #tpu.memory_space<vmem>>, %arg8: memref<256x16xf32, #tpu.memory_space<vmem>>, %arg9: memref<16x16xf32, #tpu.memory_space<vmem>>, %arg10: memref<16x16xf32, #tpu.memory_space<vmem>>, %arg11: memref<16x256xf32, #tpu.memory_space<vmem>>, %arg12: memref<1x64x256xf32, #tpu.memory_space<vmem>>) attributes {dimension_semantics = [#tpu.dimension_semantics<parallel>], iteration_bounds = array<i64: 2>, scalar_prefetch = 0 : i64, scratch_operands = 0 : i64, tpu.core_type = #tpu.core_type<tc>, window_params = [{transform_indices = @transform_0, window_bounds = array<i64: 1, 64, 256>}, {pipeline_mode = #tpu.pipeline_mode<synchronous>, transform_indices = @transform_1, window_bounds = array<i64: 8, 64>}, {pipeline_mode = #tpu.pipeline_mode<synchronous>, transform_indices = @transform_2, window_bounds = array<i64: 8, 1>}, {pipeline_mode = #tpu.pipeline_mode<synchronous>, transform_indices = @transform_3, window_bounds = array<i64: 8, 24>}, {pipeline_mode = #tpu.pipeline_mode<synchronous>, transform_indices = @transform_4, window_bounds = array<i64: 8, 1>}, {pipeline_mode = #tpu.pipeline_mode<synchronous>, transform_indices = @transform_5, window_bounds = array<i64: 64, 8>}, {pipeline_mode = #tpu.pipeline_mode<synchronous>, transform_indices = @transform_6, window_bounds = array<i64: 64, 1>}, {pipeline_mode = #tpu.pipeline_mode<synchronous>, transform_indices = @transform_7, window_bounds = array<i64: 256, 16>}, {pipeline_mode = #tpu.pipeline_mode<synchronous>, transform_indices = @transform_8, window_bounds = array<i64: 16, 16>}, {pipeline_mode = #tpu.pipeline_mode<synchronous>, transform_indices = @transform_9, window_bounds = array<i64: 16, 16>}, {pipeline_mode = #tpu.pipeline_mode<synchronous>, transform_indices = @transform_10, window_bounds = array<i64: 16, 256>}, {transform_indices = @transform_11, window_bounds = array<i64: 1, 64, 256>}]} {
    %c0 = arith.constant 0 : index
    %c0_0 = arith.constant 0 : index
    %c0_1 = arith.constant 0 : index
    %0 = vector.load %arg1[%c0, %c0_0, %c0_1] : memref<1x64x256xf32, #tpu.memory_space<vmem>>, vector<1x64x256xf32>
    %1 = vector.shape_cast %0 : vector<1x64x256xf32> to vector<64x256xf32>
    %c0_2 = arith.constant 0 : index
    %c0_3 = arith.constant 0 : index
    %2 = vector.load %arg2[%c0_2, %c0_3] : memref<8x64xf32, #tpu.memory_space<vmem>>, vector<8x64xf32>
    %cst = arith.constant dense<0.000000e+00> : vector<8x256xf32>
    %3 = tpu.matmul %2, %1, %cst {dimension_numbers = #tpu.dot_dimension_numbers<[1], [0], [0], [1], [0, 0, 1, 1], [], []>} : vector<8x64xf32>, vector<64x256xf32>, vector<8x256xf32> -> vector<8x256xf32>
    %c0_4 = arith.constant 0 : index
    %c0_5 = arith.constant 0 : index
    %4 = vector.load %arg8[%c0_4, %c0_5] : memref<256x16xf32, #tpu.memory_space<vmem>>, vector<256x16xf32>
    %cst_6 = arith.constant dense<0.000000e+00> : vector<8x16xf32>
    %5 = tpu.matmul %3, %4, %cst_6 {dimension_numbers = #tpu.dot_dimension_numbers<[1], [0], [0], [1], [0, 0, 1, 1], [], []>} : vector<8x256xf32>, vector<256x16xf32>, vector<8x16xf32> -> vector<8x16xf32>
    %c0_7 = arith.constant 0 : index
    %c0_8 = arith.constant 0 : index
    %6 = vector.load %arg3[%c0_7, %c0_8] : memref<8x1xf32, #tpu.memory_space<vmem>>, vector<8x1xf32>
    %7 = vector.broadcast %6 : vector<8x1xf32> to vector<8x16xf32>
    %8 = arith.addf %5, %7 : vector<8x16xf32>
    %cst_9 = arith.constant 0.000000e+00 : f32
    %9 = vector.broadcast %cst_9 : f32 to vector<8x16xf32>
    %10 = arith.maximumf %8, %9 : vector<8x16xf32>
    %c0_10 = arith.constant 0 : index
    %c0_11 = arith.constant 0 : index
    %11 = vector.load %arg9[%c0_10, %c0_11] : memref<16x16xf32, #tpu.memory_space<vmem>>, vector<16x16xf32>
    %cst_12 = arith.constant dense<0.000000e+00> : vector<8x16xf32>
    %12 = tpu.matmul %10, %11, %cst_12 {dimension_numbers = #tpu.dot_dimension_numbers<[1], [0], [0], [1], [0, 0, 1, 1], [], []>} : vector<8x16xf32>, vector<16x16xf32>, vector<8x16xf32> -> vector<8x16xf32>
    %c0_13 = arith.constant 0 : index
    %c0_14 = arith.constant 0 : index
    %13 = vector.load %arg10[%c0_13, %c0_14] : memref<16x16xf32, #tpu.memory_space<vmem>>, vector<16x16xf32>
    %cst_15 = arith.constant dense<0.000000e+00> : vector<8x16xf32>
    %14 = tpu.matmul %10, %13, %cst_15 {dimension_numbers = #tpu.dot_dimension_numbers<[1], [0], [0], [1], [0, 0, 1, 1], [], []>} : vector<8x16xf32>, vector<16x16xf32>, vector<8x16xf32> -> vector<8x16xf32>
    %15 = tpu.concatenate %12, %10, %14 in 0 : vector<8x16xf32>, vector<8x16xf32>, vector<8x16xf32> -> vector<24x16xf32>
    %c0_16 = arith.constant 0 : index
    %c0_17 = arith.constant 0 : index
    %16 = vector.load %arg4[%c0_16, %c0_17] : memref<8x24xf32, #tpu.memory_space<vmem>>, vector<8x24xf32>
    %cst_18 = arith.constant dense<0.000000e+00> : vector<8x16xf32>
    %17 = tpu.matmul %16, %15, %cst_18 {dimension_numbers = #tpu.dot_dimension_numbers<[1], [0], [0], [1], [0, 0, 1, 1], [], []>} : vector<8x24xf32>, vector<24x16xf32>, vector<8x16xf32> -> vector<8x16xf32>
    %c0_19 = arith.constant 0 : index
    %c0_20 = arith.constant 0 : index
    %18 = vector.load %arg5[%c0_19, %c0_20] : memref<8x1xf32, #tpu.memory_space<vmem>>, vector<8x1xf32>
    %19 = vector.broadcast %18 : vector<8x1xf32> to vector<8x16xf32>
    %20 = arith.addf %17, %19 : vector<8x16xf32>
    %cst_21 = arith.constant 0.000000e+00 : f32
    %21 = vector.broadcast %cst_21 : f32 to vector<8x16xf32>
    %22 = arith.maximumf %20, %21 : vector<8x16xf32>
    %c0_22 = arith.constant 0 : index
    %c0_23 = arith.constant 0 : index
    %23 = vector.load %arg11[%c0_22, %c0_23] : memref<16x256xf32, #tpu.memory_space<vmem>>, vector<16x256xf32>
    %cst_24 = arith.constant dense<0.000000e+00> : vector<8x256xf32>
    %24 = tpu.matmul %22, %23, %cst_24 {dimension_numbers = #tpu.dot_dimension_numbers<[1], [0], [0], [1], [0, 0, 1, 1], [], []>} : vector<8x16xf32>, vector<16x256xf32>, vector<8x256xf32> -> vector<8x256xf32>
    %c0_25 = arith.constant 0 : index
    %c0_26 = arith.constant 0 : index
    %25 = vector.load %arg6[%c0_25, %c0_26] : memref<64x8xf32, #tpu.memory_space<vmem>>, vector<64x8xf32>
    %cst_27 = arith.constant dense<0.000000e+00> : vector<64x256xf32>
    %26 = tpu.matmul %25, %24, %cst_27 {dimension_numbers = #tpu.dot_dimension_numbers<[1], [0], [0], [1], [0, 0, 1, 1], [], []>} : vector<64x8xf32>, vector<8x256xf32>, vector<64x256xf32> -> vector<64x256xf32>
    %c0_28 = arith.constant 0 : index
    %c0_29 = arith.constant 0 : index
    %27 = vector.load %arg7[%c0_28, %c0_29] : memref<64x1xf32, #tpu.memory_space<vmem>>, vector<64x1xf32>
    %28 = vector.broadcast %27 : vector<64x1xf32> to vector<64x256xf32>
    %29 = arith.addf %26, %28 : vector<64x256xf32>
    %30 = arith.negf %29 : vector<64x256xf32>
    %31 = math.exp %30 : vector<64x256xf32>
    %cst_30 = arith.constant 1.000000e+00 : f32
    %32 = vector.broadcast %cst_30 : f32 to vector<64x256xf32>
    %33 = arith.addf %32, %31 : vector<64x256xf32>
    %34 = arith.divf %32, %33 : vector<64x256xf32>
    %c0_31 = arith.constant 0 : index
    %c0_32 = arith.constant 0 : index
    %c0_33 = arith.constant 0 : index
    %35 = vector.load %arg1[%c0_31, %c0_32, %c0_33] : memref<1x64x256xf32, #tpu.memory_space<vmem>>, vector<1x64x256xf32>
    %36 = vector.shape_cast %35 : vector<1x64x256xf32> to vector<64x256xf32>
    %37 = arith.mulf %36, %34 : vector<64x256xf32>
    %c0_34 = arith.constant 0 : index
    %c0_35 = arith.constant 0 : index
    %c0_36 = arith.constant 0 : index
    %38 = vector.load %arg12[%c0_34, %c0_35, %c0_36] : memref<1x64x256xf32, #tpu.memory_space<vmem>>, vector<1x64x256xf32>
    %39 = vector.shape_cast %38 : vector<1x64x256xf32> to vector<64x256xf32>
    %40 = vector.shape_cast %37 : vector<64x256xf32> to vector<1x64x256xf32>
    tpu.vector_store %arg12[%c0_34, %c0_35, %c0_36], %40 {strides = array<i32>} : memref<1x64x256xf32, #tpu.memory_space<vmem>>, vector<1x64x256xf32>,
    return
  }
  func.func @transform_0(%arg0: i32) -> (i32, i32, i32) {
    %c0_i32 = arith.constant 0 : i32
    %c0_i32_0 = arith.constant 0 : i32
    %c0_i32_1 = arith.constant 0 : i32
    return %arg0, %c0_i32, %c0_i32_0 : i32, i32, i32
  }
  func.func @transform_1(%arg0: i32) -> (i32, i32) {
    %c0_i32 = arith.constant 0 : i32
    %c0_i32_0 = arith.constant 0 : i32
    %c0_i32_1 = arith.constant 0 : i32
    return %c0_i32, %c0_i32_0 : i32, i32
  }
  func.func @transform_2(%arg0: i32) -> (i32, i32) {
    %c0_i32 = arith.constant 0 : i32
    %c0_i32_0 = arith.constant 0 : i32
    %c0_i32_1 = arith.constant 0 : i32
    return %c0_i32, %c0_i32_0 : i32, i32
  }
  func.func @transform_3(%arg0: i32) -> (i32, i32) {
    %c0_i32 = arith.constant 0 : i32
    %c0_i32_0 = arith.constant 0 : i32
    %c0_i32_1 = arith.constant 0 : i32
    return %c0_i32, %c0_i32_0 : i32, i32
  }
  func.func @transform_4(%arg0: i32) -> (i32, i32) {
    %c0_i32 = arith.constant 0 : i32
    %c0_i32_0 = arith.constant 0 : i32
    %c0_i32_1 = arith.constant 0 : i32
    return %c0_i32, %c0_i32_0 : i32, i32
  }
  func.func @transform_5(%arg0: i32) -> (i32, i32) {
    %c0_i32 = arith.constant 0 : i32
    %c0_i32_0 = arith.constant 0 : i32
    %c0_i32_1 = arith.constant 0 : i32
    return %c0_i32, %c0_i32_0 : i32, i32
  }
  func.func @transform_6(%arg0: i32) -> (i32, i32) {
    %c0_i32 = arith.constant 0 : i32
    %c0_i32_0 = arith.constant 0 : i32
    %c0_i32_1 = arith.constant 0 : i32
    return %c0_i32, %c0_i32_0 : i32, i32
  }
  func.func @transform_7(%arg0: i32) -> (i32, i32) {
    %c0_i32 = arith.constant 0 : i32
    %c0_i32_0 = arith.constant 0 : i32
    %c0_i32_1 = arith.constant 0 : i32
    return %c0_i32, %c0_i32_0 : i32, i32
  }
  func.func @transform_8(%arg0: i32) -> (i32, i32) {
    %c0_i32 = arith.constant 0 : i32
    %c0_i32_0 = arith.constant 0 : i32
    %c0_i32_1 = arith.constant 0 : i32
    return %c0_i32, %c0_i32_0 : i32, i32
  }
  func.func @transform_9(%arg0: i32) -> (i32, i32) {
    %c0_i32 = arith.constant 0 : i32
    %c0_i32_0 = arith.constant 0 : i32
    %c0_i32_1 = arith.constant 0 : i32
    return %c0_i32, %c0_i32_0 : i32, i32
  }
  func.func @transform_10(%arg0: i32) -> (i32, i32) {
    %c0_i32 = arith.constant 0 : i32
    %c0_i32_0 = arith.constant 0 : i32
    %c0_i32_1 = arith.constant 0 : i32
    return %c0_i32, %c0_i32_0 : i32, i32
  }
  func.func @transform_11(%arg0: i32) -> (i32, i32, i32) {
    %c0_i32 = arith.constant 0 : i32
    %c0_i32_0 = arith.constant 0 : i32
    %c0_i32_1 = arith.constant 0 : i32
    return %arg0, %c0_i32, %c0_i32_0 : i32, i32, i32
  }
}

</mosaic_0001>

<bundles_post_ra>
// kernel: tpu_custom_call.1
= control target key start
LH: loop header
LB: loop body
LE: loop exit
PB: predicated region body
PF: predicated region fallthrough
CT: control target
= control target key end

     0   :  { %s2142_s0 = inlined_call_operand.vmem [shape: f32[2,64,256], index: 0, kind: input, shape index: {}]   ;;  %s2143_s1 = inlined_call_operand.vmem [shape: f32[8,64], index: 1, kind: input, shape index: {}]   ;;  %s2144_s2 = inlined_call_operand.vmem [shape: f32[8,1], index: 2, kind: input, shape index: {}]   ;;  %s2145_s3 = inlined_call_operand.vmem [shape: f32[8,24], index: 3, kind: input, shape index: {}]   ;;  %s2146_s4 = inlined_call_operand.vmem [shape: f32[8,1], index: 4, kind: input, shape index: {}]   ;;  %s2147_s5 = inlined_call_operand.vmem [shape: f32[64,8], index: 5, kind: input, shape index: {}]   ;;  %s2148_s6 = inlined_call_operand.vmem [shape: f32[64,1], index: 6, kind: input, shape index: {}]   ;;  %s2149_s7 = inlined_call_operand.vmem [shape: f32[256,16], index: 7, kind: input, shape index: {}]   ;;  %s2150_s8 = inlined_call_operand.vmem [shape: f32[16,16], index: 8, kind: input, shape index: {}]   ;;  %s2151_s9 = inlined_call_operand.vmem [shape: f32[16,16], index: 9, kind: input, shape index: {}]   ;;  %s2152_s10 = inlined_call_operand.vmem [shape: f32[16,256], index: 10, kind: input, shape index: {}]   ;;  %s2153_s11 = inlined_call_operand.hbm [shape: f32[2,64,256], index: 11, kind: output, shape index: {}]  }
   0x1   :  { %2154 = sst [smem:[#allocation6_spill]] %s2142_s0 }
   0x2   :  { %16 = vsyncpa [#allocation3], 0 }
   0x3   :  { %18 = vsyncpa [#allocation3 + $0x1], 0  ;;  %s1524_s17 = smov 0   ;;  %s1526_s18 = smov 0  }
   0x4   :  { %s1528_s19 = smov 0   ;;  %s1530_s20 = smov 0  }
   0x5 LB: > { %s1545_s21 = sadd.s32 4294967295, %s1459_s20   ;;  %s1229_s22 = sadd.s32 4294967294, %s1459_s20   ;;  %s1459_s20 = sphi %s1530_s20, %s2191_s20   ;;  %s1455_s19 = sphi %s1528_s19, %s2190_s19   ;;  %s1451_s18 = sphi %s1526_s18, %s2189_s18   ;;  %s1447_s17 = sphi %s1524_s17, %s2188_s17  }
   0x6   : > { %s1549_s23 = sadd.s32 1, %s1459_s20   ;;  %s267_s24 = sadd.s32 1, %s1455_s19 }
   0x7   : > { %s264_s25 = ssub.s32 %s1459_s20, %s1549_s23  ;;  %p277_p0 = scmp.ne.s32.totalorder %s1455_s19, %s1451_s18 }
   0x8   : > { %p265_p1 = scmp.eq.s32.totalorder %s264_s25, 0  ;;  %p278_p2 = scmp.eq.s32.totalorder %s1545_s21, 1 }
   0x9   : > { %p283_p3 = scmp.ne.s32.totalorder %s1451_s18, %s1447_s17  ;;  %p284_p4 = scmp.eq.s32.totalorder %s1229_s22, 1 }
   0xa   : > { %s1560_s26 = scalar_select %p265_p1, %s1455_s19, %s267_s24  }
   0xb   : > { %p1562_p5 = por %p278_p2, %p277_p0  ;;  %p1566_p6 = por %p284_p4, %p283_p3 }
   0xc   : > { %2155 = sst [smem:[#allocation5_spill]] %s1560_s26  ;;  %p1232_p7 = scmp.ge.s32.totalorder %s1459_s20, 1 }
   0xd   : > { %p340_p8 = scmp.lt.s32.totalorder %s1459_s20, 3 }
   0xf   : > { %p341_p9 = pnand %p1232_p7, %p340_p8 }
  0x10   : > { %p380_p10 = scmp.lt.s32.totalorder (!%p341_p9), %s1545_s21, 1  ;;  %s2158_s0 = sld [smem:[#allocation6_spill]] (!%p341_p9) }
  0x11   : > { %344 = sbr.rel (%p341_p9) target bundleno = 928 (0x3a0), region = 64  ;;  %s1417_s25 = scalar_lea.hbm (!%p341_p9), %s2153_s11, 256 }
  0x16   : > { %v477_v0 = vld [vmem:[%s2149_s7 + $0xf8] sm:$0xff]  ;;  %v476_v1 = vld [vmem:[%s2149_s7 + $0xf0] sm:$0xff]  ;;  %s381_s14 = scalar_select %p380_p10, %s1545_s21, 1  ;;  %v475_v2 = vld [vmem:[%s2149_s7 + $0xe8] sm:$0xff]  ;;  %v1461_v11 = vmov 0   ;;  %vm402_vm0 = vcmask 523264  }
  0x17   : > { %504 = vmatpush.msra.mxu3 %v477_v0  ;;  %v474_v3 = vld [vmem:[%s2149_s7 + $0xe0] sm:$0xff]  ;;  %v473_v8 = vld [vmem:[%s2149_s7 + $0xd8] sm:$0xff]  ;;  %1326 = vset.pattern.permute.xlu0 %v1461_v11  ;;  %v472_v12 = vld [vmem:[%s2149_s7 + $0xd0] sm:$0xff]  ;;  %vm527_vm1 = vcmask 130048   ;;  %vm580_vm2 = vcmask 195584   ;;  %vm708_vm3 = vcmask 64512  }
  0x18   : > { %s1280_s22 = sshll.u32 %s381_s14, 7  ;;  %1327 = vset.pattern.permute.xlu1 %v1461_v11  ;;  %v471_v15 = vld [vmem:[%s2149_s7 + $0xc8] sm:$0xff]  ;;  %v478_v18 = vld [vmem:[%s2144_s2] sm:$0xff]  ;;  %1328 = vset.pattern.permute.xlu2 %v1461_v11  ;;  %v469_v22 = vld [vmem:[%s2149_s7 + $0xb8] sm:$0xff]  ;;  %s377_s14 = sand.u32 1, %s1451_s18  }
  0x19   : > { %505 = vmatpush.msra.mxu3 %v476_v1  ;;  %s1586_s26 = scalar_lea.vmem %s2158_s0, %s1280_s22  ;;  %v470_v19 = vld [vmem:[%s2149_s7 + $0xc0] sm:$0xff]  ;;  %481 = vperm.xlu0 %1326, %v478_v18   ;;  %v468_v25 = vld [vmem:[%s2149_s7 + $0xb0] sm:$0xff]  ;;  %v461_v29 = vld [vmem:[%s2149_s7 + $0x78] sm:$0xff]  ;;  %s1233_s15 = sshll.u32 %s377_s14, 7 }
  0x1a   : > { %v400_v4 = vld [vmem:[%s1586_s26 + $0x78] sm:$0xff]  ;;  %v398_v5 = vld [vmem:[%s1586_s26 + $0x68] sm:$0xff]  ;;  %v1594_v6 = vld [vmem:[%s1586_s26 + $0x70] sm:$0xff]  ;;  %s1908_s16 = scalar_lea.vmem [#allocation2], %s1233_s15  ;;  %s1281_s22 = sshll.u32 %s1545_s21, 7 }
  0x1b   : > { %506 = vmatpush.msra.mxu3 %v475_v2  ;;  %434 = vmatpush.msra.mxu1 %v400_v4  ;;  %v1598_v7 = vld [vmem:[%s1586_s26 + $0x60] sm:$0xff]  ;;  %v396_v9 = vld [vmem:[%s1586_s26 + $0x58] sm:$0xff]  ;;  %v1605_v10 = vld [vmem:[%s1586_s26 + $0x50] sm:$0xff]  ;;  %s1163_s29 = scalar_lea.hbm %s2153_s11, %s1281_s22  ;;  %s1164_s30 = sshll.u32 %s1908_s16, 4  ;;  %s1165_s30 = int_to_ptr.vmem [resolvable:$true] %s1164_s30 }
  0x1c   : > { %414 = vmatpush.msra.mxu0 %v1594_v6  ;;  %v394_v13 = vld [vmem:[%s1586_s26 + $0x48] sm:$0xff]  ;;  %v1613_v14 = vld [vmem:[%s1586_s26 + $0x40] sm:$0xff]  ;;  %v1620_v16 = vld [vmem:[%s1586_s26 + $0x38] sm:$0xff]  ;;  %s1166_s12 = sshll.u32 %s1163_s29, 4  ;;  %s1152_s21 = scalar_lea.sflag [#allocation3], %s377_s14  ;;  %s1167_s12 = int_to_ptr.hbm [resolvable:$true] %s1166_s12 }
  0x1d   : > { %507 = vmatpush.msra.mxu3 %v474_v3  ;;  %435 = vmatpush.msra.mxu1 %v398_v5  ;;  %v1623_v17 = vld [vmem:[%s1586_s26 + $0x30] sm:$0xff]  ;;  %v1633_v20 = vld [vmem:[%s1586_s26 + $0x28] sm:$0xff]  ;;  %v1636_v21 = vld [vmem:[%s1586_s26 + $0x20] sm:$0xff]  ;;  %s1411_s13 = sshra.s32 %s1167_s12, 4  ;;  %s1412_s13 = int_to_ptr.hbm [resolvable:$true] %s1411_s13 }
  0x1e   : > { %415 = vmatpush.msra.mxu0 %v1598_v7  ;;  %v1644_v23 = vld [vmem:[%s1586_s26 + $0x18] sm:$0xff]  ;;  %v1647_v24 = vld [vmem:[%s1586_s26 + $0x10] sm:$0xff]  ;;  %v1655_v26 = vld [vmem:[%s1586_s26 + $0x8] sm:$0xff]  ;;  %s1413_s15 = scalar_lea.hbm %s1412_s13, 128  ;;  %p1418_p0 = scmp.lt.s32.totalorder %s1412_s13, %s2153_s11 }
  0x1f   : > { %508 = vmatpush.msra.mxu3 %v473_v8  ;;  %436 = vmatpush.msra.mxu1 %v396_v9  ;;  %v1658_v27 = vld [vmem:[%s1586_s26] sm:$0xff]  ;;  %v467_v30 = vld [vmem:[%s2149_s7 + $0xa8] sm:$0xff]  ;;  %v460_v32 = vld [vmem:[%s2149_s7 + $0x70] sm:$0xff]  ;;  %p1414_p11 = scmp.ne.s32.totalorder %s1412_s13, %s1413_s15  ;;  %p1419_p1 = scmp.lt.s32.totalorder %s1417_s25, %s1413_s15 }
  0x20   : > { %416 = vmatpush.msra.mxu0 %v1605_v10  ;;  %v401_v28 = vld [vmem:[%s2143_s1] sm:$0xff]  ;;  %v459_v34 = vld [vmem:[%s2149_s7 + $0x68] sm:$0xff]  ;;  %v465_v35 = vld [vmem:[%s2149_s7 + $0x98] sm:$0xff] }
  0x21   : > { %509 = vmatpush.msra.mxu3 %v472_v12  ;;  %437 = vmatpush.msra.mxu1 %v394_v13  ;;  %v574_v31 = vld [vmem:[%s2146_s4] sm:$0xff]  ;;  %v464_v37 = vld [vmem:[%s2149_s7 + $0x90] sm:$0xff]  ;;  %v457_v38 = vld [vmem:[%s2149_s7 + $0x58] sm:$0xff]  ;;  %p1415_p12 = pnand %p1414_p11, %p1562_p5  ;;  %p1420_p2 = por %p1419_p1, %p1418_p0 }
  0x22   : > { %417 = vmatpush.msra.mxu0 %v1613_v14  ;;  %v466_v33 = vld [vmem:[%s2149_s7 + $0xa0] sm:$0xff]  ;;  %577 = vperm.xlu0 %1326, %v574_v31   ;;  %v463_v39 = vld [vmem:[%s2149_s7 + $0x88] sm:$0xff]  ;;  %v456_v40 = vld [vmem:[%s2149_s7 + $0x50] sm:$0xff] }
  0x23   : > { %510 = vmatpush.msra.mxu3 %v471_v15  ;;  %438 = vmatpush.msra.mxu1 %v1620_v16  ;;  %v458_v36 = vld [vmem:[%s2149_s7 + $0x60] sm:$0xff]  ;;  %v455_v41 = vld [vmem:[%s2149_s7 + $0x48] sm:$0xff]  ;;  %v453_v43 = vld [vmem:[%s2149_s7 + $0x38] sm:$0xff]  ;;  %p1416_p13 = pneg %p1415_p12 }
  0x24   : > { %418 = vmatpush.msra.mxu0 %v1623_v17  ;;  %v454_v42 = vld [vmem:[%s2149_s7 + $0x40] sm:$0xff]  ;;  %v452_v44 = vld [vmem:[%s2149_s7 + $0x30] sm:$0xff]  ;;  %v451_v45 = vld [vmem:[%s2149_s7 + $0x28] sm:$0xff] }
  0x25   : > { %511 = vmatpush.msra.mxu3 %v470_v19  ;;  %439 = vmatpush.msra.mxu1 %v1633_v20  ;;  %v450_v46 = vld [vmem:[%s2149_s7 + $0x20] sm:$0xff]  ;;  %v449_v47 = vld [vmem:[%s2149_s7 + $0x18] sm:$0xff]  ;;  %v448_v48 = vld [vmem:[%s2149_s7 + $0x10] sm:$0xff]  ;;  %p1421_p3 = pnand %p1420_p2, %p1416_p13 }
  0x26   : > { %419 = vmatpush.msra.mxu0 %v1636_v21  ;;  %v462_v49 = vld [vmem:[%s2149_s7 + $0x80] sm:$0xff]  ;;  %v447_v50 = vld [vmem:[%s2149_s7 + $0x8] sm:$0xff]  ;;  %v667_v53 = vld [vmem:[%s2148_s6 + $0x38] sm:$0xff] }
  0x27   : > { %512 = vmatpush.msra.mxu3 %v469_v22  ;;  %440 = vmatpush.msra.mxu1 %v1644_v23  ;;  %v446_v51 = vld [vmem:[%s2149_s7] sm:$0xff]  ;;  %v526_v56 = vld [vmem:[%s2150_s8 + $0x8] sm:$0xff]  ;;  %v607_v2 = vld [vmem:[%s2152_s10 + $0x10] sm:$0xff] }
  0x28   : > { %420 = vmatpush.msra.mxu0 %v1647_v24  ;;  %v664_v52 = vld [vmem:[%s2148_s6 + $0x20] sm:$0xff]  ;;  %v552_v57 = vld [vmem:[%s2151_s9 + $0x8] sm:$0xff]  ;;  %v608_v8 = vld [vmem:[%s2152_s10 + $0x18] sm:$0xff] }
  0x29   : > { %513 = vmatpush.msra.mxu3 %v468_v25  ;;  %441 = vmatpush.msra.mxu1 %v1655_v26  ;;  %v525_v58 = vld [vmem:[%s2150_s8] sm:$0xff]  ;;  %v606_v11 = vld [vmem:[%s2152_s10 + $0x8] sm:$0xff] }
  0x2a   : > { %421 = vmatpush.msra.mxu0 %v1658_v27  ;;  %1237 = vmatmul.msk.f32.vlgmr.msra.gmra.mxu1 %vm402_vm0, %v401_v28  ;;  %v551_v59 = vld [vmem:[%s2151_s9] sm:$0xff] }
  0x2b   : > { %1236 = vmatmul.msk.f32.vlgmr.msra.gmra.mxu0 %vm402_vm0, %v401_v28  ;;  %514 = vmatpush.msra.mxu3 %v467_v30  ;;  %v573_v4 = vld [vmem:[%s2145_s3] sm:$0xff]  ;;  %v661_v30 = vld [vmem:[%s2148_s6 + $0x8] sm:$0xff] }
  0x2c   : > { %484 = vmatpush.msrb.mxu0 %v461_v29  ;;  %690 = vperm.xlu0 %1326, %v664_v52   ;;  %v605_v9 = vld [vmem:[%s2152_s10] sm:$0xff]  ;;  %v657_v29 = vld [vmem:[%s2147_s5 + $0x28] sm:$0xff] }
  0x2d   : > { %515 = vmatpush.msra.mxu3 %v466_v33  ;;  %567 = vmatpush.msrb.mxu1 %v552_v57  ;;  %v660_v19 = vld [vmem:[%s2148_s6] sm:$0xff]  ;;  %v653_v33 = vld [vmem:[%s2147_s5 + $0x8] sm:$0xff] }
  0x2e   : > { %485 = vmatpush.msrb.mxu0 %v460_v32  ;;  %670 = vperm.xlu1 %1327, %v660_v19   ;;  %v656_v22 = vld [vmem:[%s2147_s5 + $0x20] sm:$0xff]  ;;  %v658_v32 = vld [vmem:[%s2147_s5 + $0x30] sm:$0xff] }
  0x2f   : > { %516 = vmatpush.msra.mxu3 %v465_v35  ;;  %568 = vmatpush.msrb.mxu1 %v551_v59  ;;  %v652_v31 = vld [vmem:[%s2147_s5] sm:$0xff]  ;;  %v665_v35 = vld [vmem:[%s2148_s6 + $0x28] sm:$0xff] }
  0x30   : > { %486 = vmatpush.msrb.mxu0 %v459_v34  ;;  %v659_v34 = vld [vmem:[%s2147_s5 + $0x38] sm:$0xff] }
  0x31   : > { %517 = vmatpush.msra.mxu3 %v464_v37  ;;  %626 = vmatpush.msra.mxu1 %v607_v2  ;;  %v662_v37 = vld [vmem:[%s2148_s6 + $0x10] sm:$0xff] }
  0x32   : > { %487 = vmatpush.msrb.mxu0 %v458_v36  ;;  %v654_v36 = vld [vmem:[%s2147_s5 + $0x10] sm:$0xff]  ;;  %680 = vperm.xlu2 %1328, %v662_v37  }
  0x33   : > { %518 = vmatpush.msra.mxu3 %v463_v39  ;;  %627 = vmatpush.msra.mxu1 %v605_v9  ;;  %v663_v39 = vld [vmem:[%s2148_s6 + $0x18] sm:$0xff] }
  0x34   : > { %488 = vmatpush.msrb.mxu0 %v457_v38  ;;  %705 = vperm.xlu0 %1326, %v667_v53   ;;  %v655_v38 = vld [vmem:[%s2147_s5 + $0x18] sm:$0xff] }
  0x35   : > { %519 = vmatpush.msra.mxu3 %v462_v49 }
  0x36   : > { %489 = vmatpush.msrb.mxu0 %v456_v40  ;;  %675 = vperm.xlu1 %1327, %v661_v30   ;;  %v666_v40 = vld [vmem:[%s2148_s6 + $0x30] sm:$0xff] }
  0x37   : > { %545 = vmatpush.msrb.mxu3 %v526_v56 }
  0x38   : > { %490 = vmatpush.msrb.mxu0 %v455_v41 }
  0x39   : > { %546 = vmatpush.msrb.mxu3 %v525_v58 }
  0x3a   : > { %491 = vmatpush.msrb.mxu0 %v454_v42  ;;  %685 = vperm.xlu2 %1328, %v663_v39  }
  0x3c   : > { %492 = vmatpush.msrb.mxu0 %v453_v43 }
  0x3e   : > { %493 = vmatpush.msrb.mxu0 %v452_v44  ;;  %695 = vperm.xlu1 %1327, %v665_v35  }
  0x40   : > { %494 = vmatpush.msrb.mxu0 %v451_v45 }
  0x42   : > { %495 = vmatpush.msrb.mxu0 %v450_v46  ;;  %700 = vperm.xlu2 %1328, %v666_v40  }
  0x44   : > { %496 = vmatpush.msrb.mxu0 %v449_v47 }
  0x46   : > { %497 = vmatpush.msrb.mxu0 %v448_v48 }
  0x48   : > { %498 = vmatpush.msrb.mxu0 %v447_v50 }
  0x4a   : > { %499 = vmatpush.msrb.mxu0 %v446_v51 }
  0x8b   : > { %v482_v61 = vpop.permute.xlu0 %481 }
  0x8c   : > { %v1831_v41 = vpop.permute.xlu2 %680 }
  0x94   : > { %v578_v12 = vpop.permute.xlu0 %577  ;;  %v1836_v50 = vpop.permute.xlu2 %685 }
  0x9e   : > { %v1833_v46 = vpop.permute.xlu0 %690 }
  0xa0   : > { %v671_v42 = vpop.permute.xlu1 %670 }
  0xa6   : > { %v1848_v19 = vpop.permute.xlu0 %705 }
  0xa7   : > { %v443_v54 = vpop.f32.mrf.mxu1 }
  0xa8   : > { %v423_v55 = vpop.f32.mrf.mxu0  ;;  %520 = vmatmul.f32.vlgmr.msra.gmra.mxu3 %v443_v54  ;;  %v676_v51 = vpop.permute.xlu1 %675 }
  0xa9   : > { %500 = vmatmul.f32.vlgmr.msrb.gmra.mxu0 %v423_v55 }
 0x126   : > { %v501_v60 = vpop.f32.mrf.mxu0 }
 0x127   : > { %v502_v62 = vadd.f32 %v501_v60, %v482_v61  ;;  %v1838_v61 = vpop.permute.xlu2 %700 }
 0x12b   : > { %v521_v63 = vpop.f32.mrf.mxu3 }
 0x12c   : > { %v522_v0 = vadd.f32 %v521_v63, %v502_v62  ;;  %v1840_v62 = vpop.permute.xlu1 %695 }
 0x12e   : > { %v524_v1 = vmax.f32 %v522_v0, 0.0 }
 0x130   : > { %1238 = vmatmul.msk.f32.vlgmr.msrb.gmra.mxu3 %vm527_vm1, %v524_v1  ;;  %1239 = vmatmul.msk.f32.vlgmr.msrb.gmra.mxu1 %vm527_vm1, %v524_v1 }
 0x1ad   : > { %v570_v3 = vpop.f32.mrf.mxu1 }
 0x1ae   : > { %597 = vmatpush.msra.mxu0 %v570_v3 }
 0x1b0   : > { %598 = vmatpush.msra.mxu0 %v524_v1 }
 0x1b3   : > { %v548_v5 = vpop.f32.mrf.mxu3 }
 0x1b4   : > { %599 = vmatpush.msra.mxu0 %v548_v5 }
 0x1b5   : > { %1240 = vmatmul.msk.f32.vlgmr.msra.gmra.mxu0 %vm580_vm2, %v573_v4 }
 0x1b6   : > { %646 = vmatpush.msrb.mxu0 %v608_v8 }
 0x1b8   : > { %647 = vmatpush.msrb.mxu0 %v606_v11 }
 0x232   : > { %v601_v13 = vpop.f32.mrf.mxu0 }
 0x233   : > { %v602_v15 = vadd.f32 %v601_v13, %v578_v12 }
 0x235   : > { %v604_v18 = vmax.f32 %v602_v15, 0.0 }
 0x237   : > { %1241 = vmatmul.msk.f32.vlgmr.msra.gmra.mxu1 %vm527_vm1, %v604_v18  ;;  %1242 = vmatmul.msk.f32.vlgmr.msrb.gmra.mxu0 %vm527_vm1, %v604_v18 }
 0x2b4   : > { %v629_v25 = vpop.f32.mrf.mxu1  ;;  %v649_v28 = vpop.f32.mrf.mxu0 }
 0x2b5   : > { %748 = vmatpush.msrb.mxu1 %v629_v25  ;;  %1282 = vmatpush.msra.mxu2 %v629_v25 }
 0x2b6   : > { %1283 = vmatpush.msra.mxu3 %v629_v25  ;;  %1247 = vmatmul.msk.f32.vlgmr.msra.gmra.mxu2 %vm708_vm3, %v656_v22 }
 0x2b7   : > { %1248 = vmatmul.msk.f32.vlgmr.msra.gmra.mxu3 %vm708_vm3, %v657_v29  ;;  %789 = vmatpush.msrb.mxu2 %v649_v28 }
 0x2b8   : > { %1243 = vmatmul.msk.f32.vlgmr.msrb.gmra.mxu1 %vm708_vm3, %v652_v31 }
 0x2be   : > { %1251 = vmatmul.msk.f32.vlgmr.msrb.gmra.mxu2 %vm708_vm3, %v652_v31 }
 0x2bf   : > { %1249 = vmatmul.msk.f32.gmra.mxu3 %vm708_vm3, %v658_v32 }
 0x2c0   : > { %1244 = vmatmul.msk.f32.gmra.mxu1 %vm708_vm3, %v653_v33 }
 0x2c6   : > { %1252 = vmatmul.msk.f32.gmra.mxu2 %vm708_vm3, %v653_v33 }
 0x2c7   : > { %1250 = vmatmul.msk.f32.gmra.mxu3 %vm708_vm3, %v659_v34 }
 0x2c8   : > { %1245 = vmatmul.msk.f32.gmra.mxu1 %vm708_vm3, %v654_v36 }
 0x2ce   : > { %1253 = vmatmul.msk.f32.gmra.mxu2 %vm708_vm3, %v654_v36 }
 0x2d0   : > { %1246 = vmatmul.msk.f32.gmra.mxu1 %vm708_vm3, %v655_v38 }
 0x2d6   : > { %1254 = vmatmul.msk.f32.gmra.mxu2 %vm708_vm3, %v655_v38 }
 0x2de   : > { %1255 = vmatmul.msk.f32.gmra.mxu2 %vm708_vm3, %v656_v22 }
 0x2e6   : > { %1256 = vmatmul.msk.f32.gmra.mxu2 %vm708_vm3, %v657_v29 }
 0x2ee   : > { %1257 = vmatmul.msk.f32.gmra.mxu2 %vm708_vm3, %v658_v32 }
 0x2f6   : > { %1258 = vmatmul.msk.f32.gmra.mxu2 %vm708_vm3, %v659_v34 }
 0x335   : > { %v750_v43 = vpop.f32.mrf.mxu1 }
 0x336   : > { %v751_v44 = vadd.f32 %v750_v43, %v671_v42 }
 0x338   : > { %v1259_v45 = vmul.f32 -1.442695, %v751_v44 }
 0x339   : > { %v762_v47 = vpop.f32.mrf.mxu2 }
 0x33a   : > { %v763_v48 = vadd.f32 %v762_v47, %v1833_v46  ;;  %v765_v49 = vpop.f32.mrf.mxu3  ;;  %1329 = vpow2.f32 %v1259_v45 }
 0x33b   : > { %v766_v2 = vadd.f32 %v765_v49, %v1840_v62 }
 0x33c   : > { %v1267_v52 = vmul.f32 -1.442695, %v763_v48 }
 0x33d   : > { %v753_v53 = vpop.f32.mrf.mxu1  ;;  %v1269_v11 = vmul.f32 -1.442695, %v766_v2 }
 0x33e   : > { %1331 = vpow2.f32 %v1267_v52  ;;  %v754_v54 = vadd.f32 %v753_v53, %v676_v51 }
 0x340   : > { %v1330_v55 = vpop.eup %1329  ;;  %v1261_v58 = vmul.f32 -1.442695, %v754_v54 }
 0x341   : > { %v791_v56 = vpop.f32.mrf.mxu2  ;;  %v863_v57 = vadd.f32 1.0, %v1330_v55 }
 0x342   : > { %v768_v59 = vpop.f32.mrf.mxu3  ;;  %v792_v60 = vadd.f32 %v791_v56, %v671_v42 }
 0x343   : > { %1333 = vrcp.f32 %v863_v57  ;;  %v769_v1 = vadd.f32 %v768_v59, %v1838_v61  ;;  %vm884_vm4 = vweird.f32 %v863_v57  ;;  %v888_v13 = vand.u32 2147483647, %v863_v57 }
 0x344   : > { %v1332_v63 = vpop.eup %1331  ;;  %v1260_v0 = vmul.f32 -1.442695, %v792_v60  ;;  %1335 = vpow2.f32 %v1261_v58  ;;  %v890_v25 = vand.u32 2147483648, %v863_v57 }
 0x345   : > { %v1844_v3 = vadd.f32 1.0, %v1332_v63  ;;  %v756_v4 = vpop.f32.mrf.mxu1  ;;  %v1271_v8 = vmul.f32 -1.442695, %v769_v1  ;;  %vm1866_vm7 = vcmp.eq.f32.partialorder %v888_v13, 8.507059e+37 }
 0x346   : > { %1337 = vpow2.f32 %v1260_v0  ;;  %v757_v5 = vadd.f32 %v756_v4, %v1831_v41  ;;  %v891_v45 = vor.u32 1.1754944e-38, %v890_v25 }
 0x347   : > { %1339 = vrcp.f32 %v1844_v3  ;;  %v1008_v30 = vand.u32 2147483647, %v1844_v3  ;;  %v1010_v37 = vand.u32 2147483648, %v1844_v3  ;;  %vm1004_vm8 = vweird.f32 %v1844_v3 }
 0x348   : > { %v1263_v9 = vmul.f32 -1.442695, %v757_v5 }
 0x349   : > { %v1334_v12 = vpop.eup %1333  ;;  %v794_v15 = vpop.f32.mrf.mxu2  ;;  %vm1871_vm10 = vcmp.eq.f32.partialorder %v1008_v30, 8.507059e+37  ;;  %v1011_v53 = vor.u32 1.1754944e-38, %v1010_v37 }
 0x34a   : > { %v1336_v18 = vpop.eup %1335  ;;  %v880_v22 = vmul.f32 %v1334_v12, %v863_v57  ;;  %v771_v28 = vpop.f32.mrf.mxu3  ;;  %v795_v29 = vadd.f32 %v794_v15, %v676_v51  ;;  %1341 = vpow2.f32 %v1263_v9  ;;  %vm885_vm5 = vweird.f32 %v1334_v12 }
 0x34b   : > { %v772_v31 = vadd.f32 %v771_v28, %v1848_v19  ;;  %v1852_v32 = vadd.f32 1.0, %v1336_v18  ;;  %1343 = vpow2.f32 %v1271_v8  ;;  %vm1862_vm6 = vmor %vm884_vm4, %vm885_vm5 }
 0x34c   : > { %v1338_v33 = vpop.eup %1337  ;;  %v881_v34 = vsub.f32 1.0, %v880_v22  ;;  %v1262_v35 = vmul.f32 -1.442695, %v795_v29  ;;  %1345 = vpow2.f32 %v1269_v11 }
 0x34d   : > { %v1340_v36 = vpop.eup %1339  ;;  %v1855_v38 = vadd.f32 1.0, %v1338_v33  ;;  %v1273_v39 = vmul.f32 -1.442695, %v772_v31  ;;  %1347 = vrcp.f32 %v1852_v32  ;;  %vm914_vm11 = vweird.f32 %v1852_v32 }
 0x34e   : > { %v1000_v40 = vmul.f32 %v1340_v36, %v1844_v3  ;;  %v882_v42 = vmul.f32 %v1334_v12, %v881_v34  ;;  %1349 = vpow2.f32 %v1262_v35  ;;  %vm1005_vm9 = vweird.f32 %v1340_v36 }
 0x34f   : > { %1351 = vrcp.f32 %v1855_v38  ;;  %v903_v58 = vand.u32 2147483647, %v1855_v38  ;;  %v905_v59 = vand.u32 2147483648, %v1855_v38  ;;  %vm1006_vm12 = vmor %vm1004_vm8, %vm1005_vm9  ;;  %vm899_vm13 = vweird.f32 %v1855_v38 }
 0x350   : > { %v1342_v47 = vpop.eup %1341  ;;  %v1001_v48 = vsub.f32 1.0, %v1000_v40  ;;  %v883_v49 = vadd.f32 %v1334_v12, %v882_v42  ;;  %1353 = vpow2.f32 %v1273_v39  ;;  %v920_v13 = vand.u32 2147483648, %v1852_v32 }
 0x351   : > { %v1344_v51 = vpop.eup %1343  ;;  %v797_v54 = vpop.f32.mrf.mxu2  ;;  %v1875_v55 = vadd.f32 1.0, %v1342_v47  ;;  %vm1904_vm14 = vcmp.eq.f32.partialorder %v903_v58, 8.507059e+37  ;;  %v906_v25 = vor.u32 1.1754944e-38, %v905_v59 }
 0x352   : > { %v1346_v56 = vpop.eup %1345  ;;  %v1002_v57 = vmul.f32 %v1340_v36, %v1001_v48  ;;  %v887_v60 = vsel %vm1862_vm6, %v1334_v12, %v883_v49  ;;  %v798_v1 = vadd.f32 %v797_v54, %v1831_v41  ;;  %v1893_v9 = vadd.f32 1.0, %v1344_v51 }
 0x353   : > { %v1883_v63 = vpop.eup %1347  ;;  %v892_v0 = vsel %vm1866_vm7, %v891_v45, %v887_v60  ;;  %1355 = vrcp.f32 %v1875_v55  ;;  %v918_v41 = vand.u32 2147483647, %v1852_v32  ;;  %v1926_v39 = vadd.f32 1.0, %v1346_v56 }
 0x354   : > { %v1350_v2 = vpop.eup %1349  ;;  %v1003_v4 = vadd.f32 %v1340_v36, %v1002_v57  ;;  %v1119_v5 = vmul.f32 %v892_v0, %v1658_v27  ;;  %v910_v8 = vmul.f32 %v1883_v63, %v1852_v32  ;;  %v1264_v30 = vmul.f32 -1.442695, %v798_v1 }
 0x355   : > { %v1352_v11 = vpop.eup %1351  ;;  %v1899_v12 = vadd.f32 1.0, %v1350_v2  ;;  %vm915_vm15 = vweird.f32 %v1883_v63  ;;  %vm1922_vm0 = vcmp.eq.f32.partialorder %v918_v41, 8.507059e+37  ;;  %vm944_vm4 = vweird.f32 %v1875_v55 }
 0x356   : > { %v1354_v15 = vpop.eup %1353  ;;  %v1007_v27 = vsel %vm1006_vm12, %v1340_v36, %v1003_v4  ;;  %v895_v18 = vmul.f32 %v1352_v11, %v1855_v38  ;;  %1135 = vst [vmem:[%s1908_s16] sm:$0xff] %v1119_v5  ;;  %v911_v3 = vsub.f32 1.0, %v910_v8  ;;  %v921_v36 = vor.u32 1.1754944e-38, %v920_v13  ;;  %vm1937_vm2 = vmor %vm914_vm11, %vm915_vm15 }
 0x357   : > { %v1012_v28 = vsel %vm1871_vm10, %v1011_v53, %v1007_v27  ;;  %v1913_v29 = vadd.f32 1.0, %v1354_v15  ;;  %1357 = vrcp.f32 %v1899_v12  ;;  %vm900_vm1 = vweird.f32 %v1352_v11 }
 0x358   : > { %v1127_v31 = vmul.f32 %v1012_v28, %v1613_v14  ;;  %v896_v33 = vsub.f32 1.0, %v895_v18  ;;  %1359 = vrcp.f32 %v1893_v9  ;;  %v933_v14 = vand.u32 2147483647, %v1899_v12  ;;  %vm901_vm6 = vmor %vm899_vm13, %vm900_vm1 }
 0x359   : > { %v1919_v34 = vpop.eup %1355  ;;  %1361 = vrcp.f32 %v1913_v29  ;;  %v800_v37 = vpop.f32.mrf.mxu2  ;;  %v912_v42 = vmul.f32 %v1883_v63, %v911_v3  ;;  %v1098_v43 = vand.u32 2147483647, %v1913_v29  ;;  %v935_v44 = vand.u32 2147483648, %v1899_v12 }
 0x35a   : > { %1143 = vst [vmem:[%s1908_s16 + $0x40] sm:$0xff] %v1127_v31  ;;  %v897_v40 = vmul.f32 %v1352_v11, %v896_v33  ;;  %1363 = vpow2.f32 %v1264_v30  ;;  %v940_v47 = vmul.f32 %v1919_v34, %v1875_v55  ;;  %vm929_vm3 = vweird.f32 %v1899_v12 }
 0x35b   : > { %v913_v49 = vadd.f32 %v1883_v63, %v912_v42  ;;  %vm945_vm5 = vweird.f32 %v1919_v34  ;;  %v948_v52 = vand.u32 2147483647, %v1875_v55  ;;  %v950_v53 = vand.u32 2147483648, %v1875_v55 }
 0x35c   : > { %v898_v48 = vadd.f32 %v1352_v11, %v897_v40  ;;  %v941_v32 = vsub.f32 1.0, %v940_v47  ;;  %v801_v54 = vadd.f32 %v800_v37, %v1836_v50  ;;  %vm1094_vm7 = vweird.f32 %v1913_v29  ;;  %vm1971_vm9 = vmor %vm944_vm4, %vm945_vm5 }
 0x35d   : > { %v1358_v51 = vpop.eup %1357  ;;  %v1100_v58 = vand.u32 2147483648, %v1913_v29  ;;  %v917_v38 = vsel %vm1937_vm2, %v1883_v63, %v913_v49  ;;  %vm1975_vm10 = vcmp.eq.f32.partialorder %v948_v52, 8.507059e+37  ;;  %v951_v15 = vor.u32 1.1754944e-38, %v950_v53 }
 0x35e   : > { %v1952_v56 = vpop.eup %1359  ;;  %v902_v57 = vsel %vm901_vm6, %v1352_v11, %v898_v48  ;;  %v925_v59 = vmul.f32 %v1358_v51, %v1899_v12  ;;  %vm930_vm8 = vweird.f32 %v1358_v51  ;;  %v922_v1 = vsel %vm1922_vm0, %v921_v36, %v917_v38 }
 0x35f   : > { %v1362_v60 = vpop.eup %1361  ;;  %v907_v0 = vsel %vm1904_vm14, %v906_v25, %v902_v57  ;;  %v942_v2 = vmul.f32 %v1919_v34, %v941_v32  ;;  %v1121_v13 = vmul.f32 %v922_v1, %v1647_v24  ;;  %v1266_v27 = vmul.f32 -1.442695, %v801_v54  ;;  %vm931_vm13 = vmor %vm929_vm3, %vm930_vm8 }
 0x360   : > { %v1120_v4 = vmul.f32 %v907_v0, %v1655_v26  ;;  %v1090_v5 = vmul.f32 %v1362_v60, %v1913_v29  ;;  %v926_v8 = vsub.f32 1.0, %v925_v59  ;;  %v1364_v41 = vpop.eup %1363  ;;  %v1060_v3 = vmul.f32 %v1952_v56, %v1893_v9 }
 0x361   : > { %v943_v26 = vadd.f32 %v1919_v34, %v942_v2  ;;  %v803_v18 = vpop.f32.mrf.mxu2  ;;  %v1982_v25 = vadd.f32 1.0, %v1364_v41  ;;  %vm1986_vm11 = vcmp.eq.f32.partialorder %v933_v14, 8.507059e+37  ;;  %v936_v30 = vor.u32 1.1754944e-38, %v935_v44  ;;  %1137 = vst [vmem:[%s1908_s16 + $0x10] sm:$0xff] %v1121_v13 }
 0x362   : > { %1136 = vst [vmem:[%s1908_s16 + $0x8] sm:$0xff] %v1120_v4  ;;  %v1091_v22 = vsub.f32 1.0, %v1090_v5  ;;  %v927_v55 = vmul.f32 %v1358_v51, %v926_v8  ;;  %1365 = vpow2.f32 %v1266_v27  ;;  %vm1095_vm12 = vweird.f32 %v1362_v60 }
 0x363   : > { %v947_v24 = vsel %vm1971_vm9, %v1919_v34, %v943_v26  ;;  %1367 = vrcp.f32 %v1982_v25  ;;  %v1061_v36 = vsub.f32 1.0, %v1060_v3  ;;  %vm1064_vm14 = vweird.f32 %v1893_v9  ;;  %vm1096_vm0 = vmor %vm1094_vm7, %vm1095_vm12 }
 0x364   : > { %v1092_v31 = vmul.f32 %v1362_v60, %v1091_v22  ;;  %v928_v33 = vadd.f32 %v1358_v51, %v927_v55  ;;  %v952_v35 = vsel %vm1975_vm10, %v951_v15, %v947_v24  ;;  %vm1065_vm15 = vweird.f32 %v1952_v56 }
 0x365   : > { %v1123_v40 = vmul.f32 %v952_v35, %v1636_v21  ;;  %v1068_v14 = vand.u32 2147483647, %v1893_v9  ;;  %v1101_v12 = vor.u32 1.1754944e-38, %v1100_v58  ;;  %v1062_v44 = vmul.f32 %v1952_v56, %v1061_v36  ;;  %vm2013_vm2 = vmor %vm1064_vm14, %vm1065_vm15  ;;  %v759_v58 = vpop.f32.mrf.mxu1 }
 0x366   : > { %v1093_v34 = vadd.f32 %v1362_v60, %v1092_v31  ;;  %v932_v37 = vsel %vm931_vm13, %v1358_v51, %v928_v33  ;;  %vm1099_vm1 = vcmp.eq.f32.partialorder %v1098_v43, 8.507059e+37  ;;  %v1070_v48 = vand.u32 2147483648, %v1893_v9 }
 0x367   : > { %v937_v42 = vsel %vm1986_vm11, %v936_v30, %v932_v37  ;;  %1139 = vst [vmem:[%s1908_s16 + $0x20] sm:$0xff] %v1123_v40  ;;  %v965_v32 = vand.u32 2147483648, %v1982_v25  ;;  %v1063_v52 = vadd.f32 %v1952_v56, %v1062_v44  ;;  %1369 = vrcp.f32 %v1926_v39 }
 0x368   : > { %v1097_v45 = vsel %vm1096_vm0, %v1362_v60, %v1093_v34  ;;  %v1122_v47 = vmul.f32 %v937_v42, %v1644_v23  ;;  %v1366_v49 = vpop.eup %1365  ;;  %vm1069_vm3 = vcmp.eq.f32.partialorder %v1068_v14, 8.507059e+37  ;;  %v1071_v54 = vor.u32 1.1754944e-38, %v1070_v48 }
 0x369   : > { %v1102_v51 = vsel %vm1099_vm1, %v1101_v12, %v1097_v45  ;;  %v806_v29 = vpop.f32.mrf.mxu2  ;;  %v1368_v43 = vpop.eup %1367  ;;  %v2023_v53 = vadd.f32 1.0, %v1366_v49  ;;  %v1067_v57 = vsel %vm2013_vm2, %v1952_v56, %v1063_v52  ;;  %vm959_vm4 = vweird.f32 %v1982_v25 }
 0x36a   : > { %v1133_v23 = vmul.f32 %v1102_v51, %v1594_v6  ;;  %1138 = vst [vmem:[%s1908_s16 + $0x18] sm:$0xff] %v1122_v47  ;;  %v955_v9 = vmul.f32 %v1368_v43, %v1982_v25  ;;  %v1072_v6 = vsel %vm1069_vm3, %v1071_v54, %v1067_v57  ;;  %v963_v38 = vand.u32 2147483647, %v1982_v25  ;;  %v1393_v25 = vld [vmem:[%s1586_s26 + $0x48] sm:$0xff] }
 0x36b   : > { %1371 = vrcp.f32 %v2023_v53  ;;  %v966_v60 = vor.u32 1.1754944e-38, %v965_v32  ;;  %v1131_v0 = vmul.f32 %v1072_v6, %v1598_v7  ;;  %v760_v1 = vadd.f32 %v759_v58, %v1836_v50 }
 0x36c   : > { %1149 = vst [vmem:[%s1908_s16 + $0x70] sm:$0xff] %v1133_v23  ;;  %v956_v59 = vsub.f32 1.0, %v955_v9  ;;  %vm960_vm5 = vweird.f32 %v1368_v43  ;;  %v804_v56 = vadd.f32 %v803_v18, %v1833_v46  ;;  %v807_v5 = vadd.f32 %v806_v29, %v1840_v62 }
 0x36d   : > { %v1370_v2 = vpop.eup %1369  ;;  %1147 = vst [vmem:[%s1908_s16 + $0x60] sm:$0xff] %v1131_v0  ;;  %vm1034_vm6 = vweird.f32 %v1926_v39  ;;  %v1038_v63 = vand.u32 2147483647, %v1926_v39  ;;  %v1265_v11 = vmul.f32 -1.442695, %v760_v1  ;;  %v1040_v7 = vand.u32 2147483648, %v1926_v39  ;;  %vm961_vm7 = vmor %vm959_vm4, %vm960_vm5 }
 0x36e   : > { %v957_v4 = vmul.f32 %v1368_v43, %v956_v59  ;;  %v1030_v8 = vmul.f32 %v1370_v2, %v1926_v39  ;;  %v1268_v13 = vmul.f32 -1.442695, %v804_v56  ;;  %v1270_v50 = vmul.f32 -1.442695, %v807_v5 }
 0x36f   : > { %vm1035_vm8 = vweird.f32 %v1370_v2  ;;  %1373 = vpow2.f32 %v1265_v11  ;;  %vm964_vm9 = vcmp.eq.f32.partialorder %v963_v38, 8.507059e+37  ;;  %v1041_v24 = vor.u32 1.1754944e-38, %v1040_v7 }
 0x370   : > { %v958_v41 = vadd.f32 %v1368_v43, %v957_v4  ;;  %v1031_v46 = vsub.f32 1.0, %v1030_v8  ;;  %1375 = vpow2.f32 %v1268_v13  ;;  %vm2049_vm10 = vmor %vm1034_vm6, %vm1035_vm8  ;;  %vm1039_vm11 = vcmp.eq.f32.partialorder %v1038_v63, 8.507059e+37 }
 0x371   : > { %v809_v26 = vpop.f32.mrf.mxu2  ;;  %v1372_v15 = vpop.eup %1371  ;;  %1377 = vpow2.f32 %v1270_v50  ;;  %v993_v35 = vand.u32 2147483647, %v2023_v53  ;;  %vm989_vm13 = vweird.f32 %v2023_v53 }
 0x372   : > { %v810_v62 = vadd.f32 %v809_v26, %v1838_v61  ;;  %v962_v27 = vsel %vm961_vm7, %v1368_v43, %v958_v41  ;;  %v985_v18 = vmul.f32 %v1372_v15, %v2023_v53  ;;  %v1032_v55 = vmul.f32 %v1370_v2, %v1031_v46 }
 0x373   : > { %v967_v22 = vsel %vm964_vm9, %v966_v60, %v962_v27  ;;  %v995_v61 = vand.u32 2147483648, %v2023_v53  ;;  %vm990_vm12 = vweird.f32 %v1372_v15  ;;  %vm994_vm15 = vcmp.eq.f32.partialorder %v993_v35, 8.507059e+37 }
 0x374   : > { %v1272_v3 = vmul.f32 -1.442695, %v810_v62  ;;  %v1124_v28 = vmul.f32 %v967_v22, %v1633_v20  ;;  %v986_v30 = vsub.f32 1.0, %v985_v18  ;;  %v1033_v31 = vadd.f32 %v1370_v2, %v1032_v55  ;;  %vm991_vm14 = vmor %vm989_vm13, %vm990_vm12 }
 0x375   : > { %v1374_v20 = vpop.eup %1373  ;;  %v996_v12 = vor.u32 1.1754944e-38, %v995_v61 }
 0x376   : > { %1379 = vpow2.f32 %v1272_v3  ;;  %1140 = vst [vmem:[%s1908_s16 + $0x28] sm:$0xff] %v1124_v28  ;;  %v987_v33 = vmul.f32 %v1372_v15, %v986_v30  ;;  %v1037_v39 = vsel %vm2049_vm10, %v1370_v2, %v1033_v31  ;;  %v1376_v36 = vpop.eup %1375  ;;  %v869_v40 = vadd.f32 1.0, %v1374_v20 }
 0x377   : > { %v1042_v37 = vsel %vm1039_vm11, %v1041_v24, %v1037_v39  ;;  %v872_v44 = vadd.f32 1.0, %v1376_v36  ;;  %v1378_v45 = vpop.eup %1377  ;;  %v1394_v36 = vld [vmem:[%s1586_s26 + $0x58] sm:$0xff] }
 0x378   : > { %v988_v34 = vadd.f32 %v1372_v15, %v987_v33  ;;  %v1129_v42 = vmul.f32 %v1042_v37, %v1605_v10  ;;  %1381 = vrcp.f32 %v869_v40  ;;  %v2063_v32 = vadd.f32 1.0, %v1378_v45 }
 0x379   : > { %v812_v14 = vpop.f32.mrf.mxu2  ;;  %1383 = vrcp.f32 %v872_v44  ;;  %v978_v53 = vand.u32 2147483647, %v869_v40  ;;  %v980_v54 = vand.u32 2147483648, %v869_v40  ;;  %vm974_vm0 = vweird.f32 %v869_v40 }
 0x37a   : > { %v992_v47 = vsel %vm991_vm14, %v1372_v15, %v988_v34  ;;  %1145 = vst [vmem:[%s1908_s16 + $0x50] sm:$0xff] %v1129_v42  ;;  %v813_v49 = vadd.f32 %v812_v14, %v1848_v19  ;;  %1385 = vrcp.f32 %v2063_v32  ;;  %v1023_v19 = vand.u32 2147483647, %v872_v44 }
 0x37b   : > { %v997_v48 = vsel %vm994_vm15, %v996_v12, %v992_v47  ;;  %vm2070_vm2 = vcmp.eq.f32.partialorder %v978_v53, 8.507059e+37  ;;  %v981_v60 = vor.u32 1.1754944e-38, %v980_v54  ;;  %vm1019_vm3 = vweird.f32 %v872_v44 }
 0x37c   : > { %v1380_v21 = vpop.eup %1379  ;;  %v1126_v51 = vmul.f32 %v997_v48, %v1620_v16  ;;  %v1274_v10 = vmul.f32 -1.442695, %v813_v49  ;;  %v1025_v16 = vand.u32 2147483648, %v872_v44  ;;  %vm2078_vm6 = vcmp.eq.f32.partialorder %v1023_v19, 8.507059e+37 }
 0x37d   : > { %v2065_v52 = vadd.f32 1.0, %v1380_v21  ;;  %v1053_v63 = vand.u32 2147483647, %v2063_v32  ;;  %v1055_v13 = vand.u32 2147483648, %v2063_v32  ;;  %vm1049_vm10 = vweird.f32 %v2063_v32 }
 0x37e   : > { %1142 = vst [vmem:[%s1908_s16 + $0x38] sm:$0xff] %v1126_v51  ;;  %v1382_v29 = vpop.eup %1381  ;;  %v1026_v8 = vor.u32 1.1754944e-38, %v1025_v16 }
 0x37f   : > { %1387 = vrcp.f32 %v2065_v52  ;;  %v1384_v43 = vpop.eup %1383  ;;  %v970_v23 = vmul.f32 %v1382_v29, %v869_v40  ;;  %vm975_vm1 = vweird.f32 %v1382_v29  ;;  %v1083_v50 = vand.u32 2147483647, %v2065_v52  ;;  %v1395_v40 = vld [vmem:[%s1586_s26 + $0x68] sm:$0xff] }
 0x380   : > { %v1015_v9 = vmul.f32 %v1384_v43, %v872_v44  ;;  %1389 = vpow2.f32 %v1274_v10  ;;  %v1386_v59 = vpop.eup %1385  ;;  %vm2074_vm4 = vmor %vm974_vm0, %vm975_vm1  ;;  %vm1020_vm5 = vweird.f32 %v1384_v43  ;;  %v1085_v62 = vand.u32 2147483648, %v2065_v52 }
 0x381   : > { %v971_v57 = vsub.f32 1.0, %v970_v23  ;;  %v1045_v56 = vmul.f32 %v1386_v59, %v2063_v32  ;;  %vm1021_vm7 = vmor %vm1019_vm3, %vm1020_vm5  ;;  %vm1050_vm8 = vweird.f32 %v1386_v59  ;;  %v1056_v31 = vor.u32 1.1754944e-38, %v1055_v13 }
 0x382   : > { %v1016_v58 = vsub.f32 1.0, %v1015_v9  ;;  %vm1051_vm11 = vmor %vm1049_vm10, %vm1050_vm8  ;;  %vm1079_vm12 = vweird.f32 %v2065_v52  ;;  %vm1054_vm13 = vcmp.eq.f32.partialorder %v1053_v63, 8.507059e+37  ;;  %v1086_v35 = vor.u32 1.1754944e-38, %v1085_v62 }
 0x383   : > { %v972_v6 = vmul.f32 %v1382_v29, %v971_v57  ;;  %v1046_v7 = vsub.f32 1.0, %v1045_v56  ;;  %vm1084_vm15 = vcmp.eq.f32.partialorder %v1083_v50, 8.507059e+37 }
 0x384   : > { %v1017_v2 = vmul.f32 %v1384_v43, %v1016_v58 }
 0x385   : > { %v1388_v0 = vpop.eup %1387  ;;  %v973_v5 = vadd.f32 %v1382_v29, %v972_v6  ;;  %v1047_v22 = vmul.f32 %v1386_v59, %v1046_v7 }
 0x386   : > { %v1075_v11 = vmul.f32 %v1388_v0, %v2065_v52  ;;  %v1018_v41 = vadd.f32 %v1384_v43, %v1017_v2  ;;  %v1390_v26 = vpop.eup %1389  ;;  %vm1080_vm9 = vweird.f32 %v1388_v0  ;;  %v1396_v52 = vld [vmem:[%s1586_s26 + $0x78] sm:$0xff] }
 0x387   : > { %v977_v15 = vsel %vm2074_vm4, %v1382_v29, %v973_v5  ;;  %v878_v55 = vadd.f32 1.0, %v1390_v26  ;;  %v1048_v61 = vadd.f32 %v1386_v59, %v1047_v22  ;;  %vm1081_vm14 = vmor %vm1079_vm12, %vm1080_vm9 }
 0x388   : > { %v1076_v46 = vsub.f32 1.0, %v1075_v11  ;;  %v982_v27 = vsel %vm2070_vm2, %v981_v60, %v977_v15  ;;  %v1022_v18 = vsel %vm1021_vm7, %v1384_v43, %v1018_v41 }
 0x389   : > { %v1125_v3 = vmul.f32 %v982_v27, %v1623_v17  ;;  %v1027_v28 = vsel %vm2078_vm6, %v1026_v8, %v1022_v18  ;;  %1391 = vrcp.f32 %v878_v55  ;;  %v1052_v17 = vsel %vm1051_vm11, %v1386_v59, %v1048_v61 }
 0x38a   : > { %v1077_v30 = vmul.f32 %v1388_v0, %v1076_v46  ;;  %v1128_v24 = vmul.f32 %v1393_v25, %v1027_v28  ;;  %v1057_v20 = vsel %vm1054_vm13, %v1056_v31, %v1052_v17  ;;  %v1115_v45 = vand.u32 2147483648, %v878_v55 }
 0x38b   : > { %1141 = vst [vmem:[%s1908_s16 + $0x30] sm:$0xff] %v1125_v3  ;;  %v1130_v34 = vmul.f32 %v1394_v36, %v1057_v20  ;;  %v1113_v21 = vand.u32 2147483647, %v878_v55  ;;  %vm1109_vm1 = vweird.f32 %v878_v55 }
 0x38c   : > { %v1078_v33 = vadd.f32 %v1388_v0, %v1077_v30  ;;  %1144 = vst [vmem:[%s1908_s16 + $0x48] sm:$0xff] %v1128_v24  ;;  %v1116_v49 = vor.u32 1.1754944e-38, %v1115_v45 }
 0x38d   : > { %1146 = vst [vmem:[%s1908_s16 + $0x58] sm:$0xff] %v1130_v34  ;;  %vm1114_vm3 = vcmp.eq.f32.partialorder %v1113_v21, 8.507059e+37 }
 0x38e   : > { %v1082_v39 = vsel %vm1081_vm14, %v1388_v0, %v1078_v33 }
 0x38f   : > { %v1087_v37 = vsel %vm1084_vm15, %v1086_v35, %v1082_v39  ;;  %v1392_v12 = vpop.eup %1391 }
 0x390   : > { %v1132_v14 = vmul.f32 %v1395_v40, %v1087_v37  ;;  %v1105_v42 = vmul.f32 %v1392_v12, %v878_v55  ;;  %vm1110_vm0 = vweird.f32 %v1392_v12 }
 0x391   : > { %vm1111_vm2 = vmor %vm1109_vm1, %vm1110_vm0 }
 0x392   : > { %1148 = vst [vmem:[%s1908_s16 + $0x68] sm:$0xff] %v1132_v14  ;;  %v1106_v44 = vsub.f32 1.0, %v1105_v42 }
 0x394   : > { %v1107_v47 = vmul.f32 %v1392_v12, %v1106_v44 }
 0x396   : > { %v1108_v48 = vadd.f32 %v1392_v12, %v1107_v47 }
 0x398   : > { %v1112_v51 = vsel %vm1111_vm2, %v1392_v12, %v1108_v48 }
 0x399   : > { %v1117_v32 = vsel %vm1114_vm3, %v1116_v49, %v1112_v51 }
 0x39a   : > { %v1134_v10 = vmul.f32 %v1396_v52, %v1117_v32 }
 0x39c   : > { %1150 = vst [vmem:[%s1908_s16 + $0x78] sm:$0xff] %v1134_v10 }
 0x39d   : > { %1424 = shalt.err (!%p1421_p3)
}
 0x39e   : > { %s1462_s26 = smov 256   ;;  %s1463_s14 = smov 16  }
 0x39f   : > { %1284 = dma.vmem_to_hbm [thread:$0]  (%p1562_p5), %s1165_s30, 2048, %s1167_s12, %s1152_s21, %s1462_s26, %s1462_s26, %s1463_s14  }
 0x3a0 PF: > { %p1290_p4 = scmp.ge.s32.totalorder %s1459_s20, 2  ;;  %s1181_s16 = sand.u32 1, %s1447_s17  }
 0x3a1   : > { %s1182_s0 = scalar_lea.sflag [#allocation3], %s1181_s16 }
 0x3a2   : > { %p1287_p7 = pnand %p1290_p4, %p1566_p6 }
 0x3a4   : > { %p1288_p8 = pneg %p1287_p7 }
 0x3a6   : > { %1442 = dma.done.wait (%p1288_p8), %s1182_s0, 2048  }
 0x3a7   : > { %1444 = vsyncadd (%p1288_p8), %s1182_s0, 4294965248  ;;  %s2187_s13 = sld [smem:[#allocation5_spill]]  ;;  %p21_p9 = scmp.ge.s32.totalorder %s1549_s23, 4  }
 0x3a8   : > { %s2188_s17 = smov %s1451_s18  ;;  %s2189_s18 = smov %s1455_s19 }
 0x3a9   : > { %s2191_s20 = smov %s1549_s23  ;;  %23 = sbr.rel (!%p21_p9) target bundleno = 5 (0x5), region = 99 }
 0x3ad   : > { %s2190_s19 = smov %s2187_s13 }
 0x3ae   :  { %1188 = vsyncpa [#allocation3], 1 }
 0x3af   :  { %1190 = vsyncpa [#allocation3 + $0x1], 1 }

</bundles_post_ra>
